<compile_context>
chip_gen: v7x
topology: tpu7x:2x2x1
jax: 0.10.0
libtpu: 0.0.40
codegen_flags: <defaults>
</compile_context>

<pallas_src>
import functools

import jax
import jax.numpy as jnp
from jax.experimental import pallas as pl
from jax.experimental.pallas import tpu as pltpu

_MIB = 1024 * 1024


def _round_up(n, m):
    return ((n + m - 1) // m) * m


def _cdiv(a, b):
    return (a + b - 1) // b


# ---------------------------------------------------------------------------
# Kernels
# ---------------------------------------------------------------------------

def _ffn_stream_kernel(x_ref, w1_ref, b1_ref, w2_ref, b2_ref, o_ref, acc_ref):
    """Streaming path: grid = (row tiles, F chunks); acc resident across F."""
    j = pl.program_id(1)

    @pl.when(j == 0)
    def _():
        # Initialize the accumulator with b2 (drops the epilogue add).
        acc_ref[...] = jnp.broadcast_to(b2_ref[...].astype(jnp.float32),
                                        acc_ref.shape)

    # First matmul on the MXU with f32 accumulation; bias + ReLU in f32 on the VPU.
    h = jnp.dot(x_ref[...], w1_ref[...], preferred_element_type=jnp.float32)
    h = jnp.maximum(h + b1_ref[...].astype(jnp.float32), 0.0)

    # Second matmul accumulates this F-slice's partial contraction.
    acc_ref[...] += jnp.dot(h.astype(w2_ref.dtype), w2_ref[...],
                            preferred_element_type=jnp.float32)

    @pl.when(j == pl.num_programs(1) - 1)
    def _():
        o_ref[...] = acc_ref[...].astype(o_ref.dtype)


def _ffn_resident_kernel(x_ref, w1_ref, b1_ref, w2_ref, b2_ref, o_ref, *, tf):
    """Weight-resident path: whole w1/w2 live in VMEM (DMA'd once); loop over F in
    static tf-wide chunks so only a (tm, tf) intermediate exists at a time."""
    F = w1_ref.shape[1]
    x = x_ref[...]
    acc = jnp.broadcast_to(b2_ref[...].astype(jnp.float32), o_ref.shape)
    for j in range(F // tf):                     # static trip count
        sl = pl.ds(j * tf, tf)
        h = jnp.dot(x, w1_ref[:, sl], preferred_element_type=jnp.float32)
        h = jnp.maximum(h + b1_ref[:, sl].astype(jnp.float32), 0.0)
        acc = acc + jnp.dot(h.astype(w2_ref.dtype), w2_ref[sl, :],
                            preferred_element_type=jnp.float32)
    o_ref[...] = acc.astype(o_ref.dtype)


# ---------------------------------------------------------------------------
# Device-aware tile / VMEM selection
# ---------------------------------------------------------------------------

def _device_info():
    kind = ""
    try:
        kind = jax.devices()[0].device_kind.lower()
    except Exception:
        pass
    vmem_cap = None
    try:
        vmem_cap = int(pltpu.get_tpu_info().vmem_capacity_bytes)
    except Exception:
        vmem_cap = None
    if vmem_cap is None or vmem_cap < 16 * _MIB:
        vmem_cap = 64 * _MIB                      # conservative (v7x-sized) fallback
    if "v6" in kind:
        gen, tm_target, num_tc = "v6e", 1024, 1
    elif "v5" in kind:
        gen, tm_target, num_tc = "v5e", 512, 1
    elif "v7" in kind or "7x" in kind:
        gen, tm_target, num_tc = "v7x", 512, 2
    else:
        gen, tm_target, num_tc = "unknown", 512, 2
    return gen, tm_target, num_tc, vmem_cap


def _est_streaming(tm, tf, H, isz, wbuf):
    return (2 * tm * H * isz                      # x blocks (double-buffered)
            + wbuf * (H * tf + tf * H) * isz      # w1/w2 slices
            + 2 * (tf + H) * 4                    # f32 bias slices
            + 2 * tm * H * isz                    # output blocks
            + 4 * tm * H                          # f32 accumulator scratch
            + 6 * tm * tf)                        # f32 h + its bf16 copy (internal)


def _est_resident(tm, tf, H, F, isz):
    return (2 * tm * H * isz
            + 2 * (H * F + F * H) * isz           # whole weights (double-buffered)
            + 2 * (F + H) * 4
            + 2 * tm * H * isz
            + 4 * tm * H                          # f32 running accumulator
            + 6 * tm * tf)                        # per-chunk intermediate


def _select_config(M, H, F, isz, tm_user, tf_user, resident_user):
    gen, tm_target, num_tc, vmem_cap = _device_info()
    budget = min(vmem_cap - 8 * _MIB, 100 * _MIB)

    tm_cap = max(8, min(_round_up(tm_target, 8), _round_up(M, 8)))
    tm_cands = [t for t in (1024, 768, 512, 384, 256, 128, 64, 32, 16, 8)
                if t <= tm_cap]
    if not tm_cands or tm_cands[0] < tm_cap:
        tm_cands = [tm_cap] + tm_cands
    if tm_user is not None:
        tm_cands = [max(8, min(_round_up(tm_user, 8), _round_up(M, 8)))]

    # Prefer tf = multiple of 256 (full-width passes on the 2x256^2 MXU).
    tf_cands = [c for c in (1024, 512, 256) if F % c == 0]
    if not tf_cands:
        tf_cands = [c for c in (384, 128, 64, 32, 16, 8) if F % c == 0] or [F]
    if tf_user is not None:
        assert F % tf_user == 0, "tf must divide F = 4*hidden"
        tf_cands = [tf_user]

    def pick(est_fn):
        for tm in tm_cands:                       # prioritize the biggest row tile
            for tf in tf_cands:
                if est_fn(tm, tf) <= budget:
                    return tm, tf
        return None

    resident = resident_user
    if resident is None:
        # weight-resident only when double-buffered whole weights use <= ~half budget
        resident = (2 * (H * F + F * H) * isz) <= budget // 2
    w_buffers = 2
    choice = None
    if resident:
        choice = pick(lambda tm, tf: _est_resident(tm, tf, H, F, isz))
        if choice is None:
            resident = False
    if not resident:
        w_buffers = 3 if gen == "v5e" else 2      # hide weight DMA on lowest-BW gen
        choice = pick(lambda tm, tf: _est_streaming(tm, tf, H, isz, w_buffers))
        if choice is None and w_buffers != 2:
            w_buffers = 2
            choice = pick(lambda tm, tf: _est_streaming(tm, tf, H, isz, 2))
        if choice is None:
            choice = (8, tf_cands[-1])            # last resort: tiniest tiles

    tm, tf = choice

    # Guarantee >= 2 row tiles on 2-TensorCore chips when there is enough work.
    if num_tc >= 2 and _cdiv(M, tm) == 1 and M >= 512:
        tm = max(256, min(tm, _round_up(_cdiv(M, 2), 256)))

    est = (_est_resident(tm, tf, H, F, isz) if resident
           else _est_streaming(tm, tf, H, isz, w_buffers))
    vmem_limit = int(min(vmem_cap - 4 * _MIB, max(32 * _MIB, est + 8 * _MIB)))
    return dict(resident=resident, tm=tm, tf=tf, w_buffers=w_buffers,
                vmem_limit_bytes=vmem_limit)


# ---------------------------------------------------------------------------
# pallas_call wrapper
# ---------------------------------------------------------------------------

@functools.partial(
    jax.jit,
    static_argnames=("tm", "tf", "resident", "w_buffers", "vmem_limit_bytes",
                     "compute_dtype"))
def _expert_ffn_impl(x, w1, b1, w2, b2, *, tm, tf, resident, w_buffers,
                     vmem_limit_bytes, compute_dtype):
    batch, seq, H = x.shape
    F = w1.shape[1]
    M = batch * seq

    x2d = x.reshape(M, H).astype(compute_dtype)
    w1c = w1.astype(compute_dtype)
    w2c = w2.astype(compute_dtype)
    b1r = b1.reshape(1, F).astype(jnp.float32)
    b2r = b2.reshape(1, H).astype(jnp.float32)

    grid_m = pl.cdiv(M, tm)    # ragged last tile: Pallas masks OOB writes (no jnp.pad)
    compiler_params = pltpu.CompilerParams(
        dimension_semantics=("parallel",) if resident else ("parallel", "arbitrary"),
        vmem_limit_bytes=vmem_limit_bytes)

    if resident:
        grid_spec = pltpu.PrefetchScalarGridSpec(
            num_scalar_prefetch=0,
            grid=(grid_m,),
            in_specs=[
                pl.BlockSpec((tm, H), lambda i: (i, 0)),    # x rows
                pl.BlockSpec((H, F), lambda i: (0, 0)),     # whole w1 (DMA'd once)
                pl.BlockSpec((1, F), lambda i: (0, 0)),     # b1
                pl.BlockSpec((F, H), lambda i: (0, 0)),     # whole w2 (DMA'd once)
                pl.BlockSpec((1, H), lambda i: (0, 0)),     # b2
            ],
            out_specs=pl.BlockSpec((tm, H), lambda i: (i, 0)),
        )
        kernel = functools.partial(_ffn_resident_kernel, tf=tf)
    else:
        def _w_spec(shape, index_map):
            if w_buffers != 2:
                try:
                    return pl.BlockSpec(shape, index_map,
                                        pipeline_mode=pl.Buffered(w_buffers))
                except TypeError:                 # older API: fall back silently
                    pass
            return pl.BlockSpec(shape, index_map)

        grid_spec = pltpu.PrefetchScalarGridSpec(
            num_scalar_prefetch=0,
            grid=(grid_m, F // tf),                          # (row tiles, F reduction)
            in_specs=[
                pl.BlockSpec((tm, H), lambda i, j: (i, 0)),  # x rows
                _w_spec((H, tf), lambda i, j: (0, j)),       # w1 slice
                pl.BlockSpec((1, tf), lambda i, j: (0, j)),  # b1 slice
                _w_spec((tf, H), lambda i, j: (j, 0)),       # w2 slice
                pl.BlockSpec((1, H), lambda i, j: (0, 0)),   # b2 (constant)
            ],
            out_specs=pl.BlockSpec((tm, H), lambda i, j: (i, 0)),
            scratch_shapes=[pltpu.VMEM((tm, H), jnp.float32)],
        )
        kernel = _ffn_stream_kernel

    out2d = pl.pallas_call(
        kernel,
        out_shape=jax.ShapeDtypeStruct((M, H), x.dtype),
        grid_spec=grid_spec,
        compiler_params=compiler_params,
    )(x2d, w1c, b1r, w2c, b2r)

    return out2d.reshape(batch, seq, H)


def expert_ffn(x, w1, b1, w2, b2, *, tm=None, tf=None, resident=None,
               compute_dtype=jnp.bfloat16):
    """ExpertFFN forward: relu(x @ w1 + b1) @ w2 + b2.

    x: [batch, seq, H]; weights stored [in, out] (transposed vs torch's [out, in]).
    Returns [batch, seq, H] in x.dtype."""
    batch, seq, H = x.shape
    F = w1.shape[1]
    assert w1.shape == (H, F) and w2.shape == (F, H)
    assert b1.size == F and b2.size == H
    M = batch * seq
    isz = jnp.dtype(compute_dtype).itemsize
    cfg = _select_config(M, H, F, isz, tm, tf, resident)
    return _expert_ffn_impl(x, w1, b1, w2, b2, compute_dtype=compute_dtype, **cfg)


def init_params(key, hidden_dim):
    """Deterministic init matching torch.nn.Linear defaults:
    U(-1/sqrt(in), 1/sqrt(in)) for both weight and bias; weights stored [in, out]."""
    H, F = hidden_dim, hidden_dim * 4
    k1, k2, k3, k4 = jax.random.split(key, 4)
    bound1 = 1.0 / jnp.sqrt(H)
    bound2 = 1.0 / jnp.sqrt(F)
    w1 = jax.random.uniform(k1, (H, F), jnp.float32, -bound1, bound1)
    b1 = jax.random.uniform(k2, (1, F), jnp.float32, -bound1, bound1)
    w2 = jax.random.uniform(k3, (F, H), jnp.float32, -bound2, bound2)
    b2 = jax.random.uniform(k4, (1, H), jnp.float32, -bound2, bound2)
    return w1, b1, w2, b2


if __name__ == "__main__":
    key = jax.random.PRNGKey(0)
    kx, kp = jax.random.split(key)

    batch, seq, hidden = 2, 8, 32
    x = jax.random.normal(kx, (batch, seq, hidden), jnp.float32)
    w1, b1, w2, b2 = init_params(kp, hidden)

    # Pure-JAX reference mimicking the kernel's bf16 MXU operands / f32 accumulation.
    def ref_fn(x, w1, b1, w2, b2):
        f = lambda a: a.astype(jnp.bfloat16).astype(jnp.float32)
        h = jnp.maximum(f(x).reshape(-1, hidden) @ f(w1) + b1.reshape(1, -1), 0.0)
        return (f(h) @ f(w2) + b2.reshape(1, -1)).reshape(x.shape)

    ref = ref_fn(x, w1, b1, w2, b2)

    # Auto-selected path (weight-resident for this small expert).
    out = jax.block_until_ready(expert_ffn(x, w1, b1, w2, b2))
    assert out.shape == (batch, seq, hidden)
    assert jnp.allclose(out, ref, atol=2e-2, rtol=2e-2), "resident path mismatch"

    # Force the streaming (large-expert) path too, for coverage.
    out_s = jax.block_until_ready(expert_ffn(x, w1, b1, w2, b2, resident=False))
    assert jnp.allclose(out_s, ref, atol=2e-2, rtol=2e-2), "streaming path mismatch"

    print("KERNEL_OK")
</pallas_src>

<mosaic_0001>
module attributes {stable_mosaic.version = 11 : i64} {
  func.func @_ffn_resident_kernel(%arg0: i32, %arg1: memref<16x32xbf16, #tpu.memory_space<vmem>>, %arg2: memref<32x128xbf16, #tpu.memory_space<vmem>>, %arg3: memref<1x128xf32, #tpu.memory_space<vmem>>, %arg4: memref<128x32xbf16, #tpu.memory_space<vmem>>, %arg5: memref<1x32xf32, #tpu.memory_space<vmem>>, %arg6: memref<16x32xf32, #tpu.memory_space<vmem>>) attributes {dimension_semantics = [#tpu.dimension_semantics<parallel>], iteration_bounds = array<i64: 1>, scalar_prefetch = 0 : i64, scratch_operands = 0 : i64, tpu.core_type = #tpu.core_type<tc>, window_params = [{transform_indices = @transform_0, window_bounds = array<i64: 16, 32>}, {pipeline_mode = #tpu.pipeline_mode<synchronous>, transform_indices = @transform_1, window_bounds = array<i64: 32, 128>}, {pipeline_mode = #tpu.pipeline_mode<synchronous>, transform_indices = @transform_2, window_bounds = array<i64: 1, 128>}, {pipeline_mode = #tpu.pipeline_mode<synchronous>, transform_indices = @transform_3, window_bounds = array<i64: 128, 32>}, {pipeline_mode = #tpu.pipeline_mode<synchronous>, transform_indices = @transform_4, window_bounds = array<i64: 1, 32>}, {transform_indices = @transform_5, window_bounds = array<i64: 16, 32>}]} {
    %c0 = arith.constant 0 : index
    %c0_0 = arith.constant 0 : index
    %0 = vector.load %arg1[%c0, %c0_0] : memref<16x32xbf16, #tpu.memory_space<vmem>>, vector<16x32xbf16>
    %c0_1 = arith.constant 0 : index
    %c0_2 = arith.constant 0 : index
    %1 = vector.load %arg5[%c0_1, %c0_2] : memref<1x32xf32, #tpu.memory_space<vmem>>, vector<1x32xf32>
    %2 = vector.shape_cast %1 : vector<1x32xf32> to vector<1x32xf32>
    %3 = vector.broadcast %2 : vector<1x32xf32> to vector<16x32xf32>
    %c0_3 = arith.constant 0 : index
    %c0_4 = arith.constant 0 : index
    %4 = vector.load %arg2[%c0_3, %c0_4] : memref<32x128xbf16, #tpu.memory_space<vmem>>, vector<32x128xbf16>
    %cst = arith.constant dense<0.000000e+00> : vector<16x128xf32>
    %5 = tpu.matmul %0, %4, %cst {dimension_numbers = #tpu.dot_dimension_numbers<[1], [0], [0], [1], [0, 0, 1, 1], [], []>} : vector<16x32xbf16>, vector<32x128xbf16>, vector<16x128xf32> -> vector<16x128xf32>
    %c0_5 = arith.constant 0 : index
    %c0_6 = arith.constant 0 : index
    %6 = vector.load %arg3[%c0_5, %c0_6] : memref<1x128xf32, #tpu.memory_space<vmem>>, vector<1x128xf32>
    %7 = vector.broadcast %6 : vector<1x128xf32> to vector<16x128xf32>
    %8 = arith.addf %5, %7 : vector<16x128xf32>
    %cst_7 = arith.constant 0.000000e+00 : f32
    %9 = vector.broadcast %cst_7 : f32 to vector<16x128xf32>
    %10 = arith.maximumf %8, %9 : vector<16x128xf32>
    %11 = arith.truncf %10 : vector<16x128xf32> to vector<16x128xbf16>
    %c0_8 = arith.constant 0 : index
    %c0_9 = arith.constant 0 : index
    %12 = vector.load %arg4[%c0_8, %c0_9] : memref<128x32xbf16, #tpu.memory_space<vmem>>, vector<128x32xbf16>
    %cst_10 = arith.constant dense<0.000000e+00> : vector<16x32xf32>
    %13 = tpu.matmul %11, %12, %cst_10 {dimension_numbers = #tpu.dot_dimension_numbers<[1], [0], [0], [1], [0, 0, 1, 1], [], []>} : vector<16x128xbf16>, vector<128x32xbf16>, vector<16x32xf32> -> vector<16x32xf32>
    %14 = arith.addf %3, %13 : vector<16x32xf32>
    %c0_11 = arith.constant 0 : index
    %c0_12 = arith.constant 0 : index
    %15 = vector.load %arg6[%c0_11, %c0_12] : memref<16x32xf32, #tpu.memory_space<vmem>>, vector<16x32xf32>
    tpu.vector_store %arg6[%c0_11, %c0_12], %14 {strides = array<i32>} : memref<16x32xf32, #tpu.memory_space<vmem>>, vector<16x32xf32>,
    return
  }
  func.func @transform_0(%arg0: i32) -> (i32, i32) {
    %c0_i32 = arith.constant 0 : i32
    %c0_i32_0 = arith.constant 0 : i32
    return %arg0, %c0_i32 : i32, i32
  }
  func.func @transform_1(%arg0: i32) -> (i32, i32) {
    %c0_i32 = arith.constant 0 : i32
    %c0_i32_0 = arith.constant 0 : i32
    %c0_i32_1 = arith.constant 0 : i32
    return %c0_i32, %c0_i32_0 : i32, i32
  }
  func.func @transform_2(%arg0: i32) -> (i32, i32) {
    %c0_i32 = arith.constant 0 : i32
    %c0_i32_0 = arith.constant 0 : i32
    %c0_i32_1 = arith.constant 0 : i32
    return %c0_i32, %c0_i32_0 : i32, i32
  }
  func.func @transform_3(%arg0: i32) -> (i32, i32) {
    %c0_i32 = arith.constant 0 : i32
    %c0_i32_0 = arith.constant 0 : i32
    %c0_i32_1 = arith.constant 0 : i32
    return %c0_i32, %c0_i32_0 : i32, i32
  }
  func.func @transform_4(%arg0: i32) -> (i32, i32) {
    %c0_i32 = arith.constant 0 : i32
    %c0_i32_0 = arith.constant 0 : i32
    %c0_i32_1 = arith.constant 0 : i32
    return %c0_i32, %c0_i32_0 : i32, i32
  }
  func.func @transform_5(%arg0: i32) -> (i32, i32) {
    %c0_i32 = arith.constant 0 : i32
    %c0_i32_0 = arith.constant 0 : i32
    return %arg0, %c0_i32 : i32, i32
  }
}

</mosaic_0001>

<bundles_post_ra>
// kernel: _expert_ffn_impl.1
= control target key start
LH: loop header
LB: loop body
LE: loop exit
PB: predicated region body
PF: predicated region fallthrough
CT: control target
= control target key end

     0   :  { %v326_v1 = vmov 0.0   ;;  %vm327_vm0 = vmmov 0   ;;  %vm59_vm1 = vcmask 261120   ;;  %s415_s0 = inlined_call_operand.vmem [shape: bf16[16,32], index: 0, kind: input, shape index: {}]   ;;  %s416_s1 = inlined_call_operand.vmem [shape: bf16[32,128], index: 1, kind: input, shape index: {}]   ;;  %s417_s2 = inlined_call_operand.vmem [shape: f32[1,128], index: 2, kind: input, shape index: {}]   ;;  %s418_s3 = inlined_call_operand.vmem [shape: bf16[128,32], index: 3, kind: input, shape index: {}]   ;;  %s419_s4 = inlined_call_operand.vmem [shape: f32[1,32], index: 4, kind: input, shape index: {}]   ;;  %s420_s5 = inlined_call_operand.hbm [shape: f32[16,32], index: 5, kind: output, shape index: {}]  }
   0x1   :  { %v291_v0 = vld [vmem:[%s416_s1] sm:$0xff]   ;;  %258 = vmatprep.subr.bf16.mxu0 %v326_v1  ;;  %266 = vmatprep.subr.bf16.mxu1 %v326_v1  ;;  %v292_v2 = vld [vmem:[%s416_s1 + $0x8] sm:$0xff]   ;;  %v296_v6 = vld [vmem:[%s418_s3 + $0x10] sm:$0xff]  }
   0x2   :  { %259 = vmatpush3.bf16.msra.mxu0 %v291_v0  ;;  %262 = vmatprep.mubr.msk.bf16.mxu0 %vm327_vm0, %v326_v1  ;;  %v294_v3 = vld [vmem:[%s418_s3] sm:$0xff]   ;;  %v295_v5 = vld [vmem:[%s418_s3 + $0x8] sm:$0xff]  }
   0x3   :  { %260 = vmatprep.subr.bf16.mxu0 %v326_v1  ;;  %282 = vmatprep.mubr.msk.bf16.mxu1 %vm327_vm0, %v326_v1  ;;  %v293_v4 = vld [vmem:[%s415_s0] sm:$0xff]  }
   0x4   :  { %267 = vmatpush3.bf16.msra.mxu1 %v294_v3 }
   0x5   :  { %268 = vmatprep.subr.bf16.mxu1 %v326_v1 }
   0x6   :  { %261 = vmatpush3.bf16.msra.mxu0 %v292_v2 }
   0x8   :  { %269 = vmatpush3.bf16.msra.mxu1 %v295_v5 }
   0x9   :  { %263 = vmatmul.mubr.msk.bf16.vlgmr.msra.gmra.mrb[0].mxu0 %vm59_vm1, %v293_v4  ;;  %270 = vmatprep.subr.bf16.mxu1 %v326_v1 }
   0xa   :  { %10 = vsyncpa [#allocation3], 0  ;;  %v297_v7 = vld [vmem:[%s418_s3 + $0x18] sm:$0xff]   ;;  %v298_v8 = vld [vmem:[%s418_s3 + $0x20] sm:$0xff]  }
   0xb   :  { %v299_v9 = vld [vmem:[%s418_s3 + $0x28] sm:$0xff]   ;;  %v300_v10 = vld [vmem:[%s418_s3 + $0x30] sm:$0xff]   ;;  %v301_v11 = vld [vmem:[%s418_s3 + $0x38] sm:$0xff]   ;;  %s328_s3 = smov [#allocation2]  }
   0xc   :  { %271 = vmatpush3.bf16.msra.mxu1 %v296_v6  ;;  %v233_v12 = vld [vmem:[%s417_s2] ss:$0 sm:$0xff]  ;;  %s221_s17 = sshll.u32 %s328_s3, 4  ;;  %s222_s17 = int_to_ptr.vmem [resolvable:$true] %s221_s17 }
   0xd   :  { %272 = vmatprep.subr.bf16.mxu1 %v326_v1  ;;  %v232_v22 = vld [vmem:[%s419_s4] ss:$0 sm:$0xff]  ;;  %s302_s2 = scalar_lea.vmem %s222_s17, 256  ;;  %p307_p1 = scmp.lt.s32.totalorder %s222_s17, %s222_s17 }
   0xe   :  { %p303_p0 = scmp.ne.s32.totalorder %s222_s17, %s302_s2  ;;  %p308_p2 = scmp.lt.s32.totalorder %s302_s2, %s302_s2 }
  0x10   :  { %273 = vmatpush3.bf16.msra.mxu1 %v297_v7  ;;  %p309_p3 = por %p308_p2, %p307_p1 }
  0x11   :  { %274 = vmatprep.subr.bf16.mxu1 %v326_v1 }
  0x12   :  { %p310_p4 = pnand %p309_p3, %p303_p0 }
  0x14   :  { %275 = vmatpush3.bf16.msra.mxu1 %v298_v8 }
  0x15   :  { %276 = vmatprep.subr.bf16.mxu1 %v326_v1 }
  0x18   :  { %277 = vmatpush3.bf16.msra.mxu1 %v299_v9 }
  0x19   :  { %278 = vmatprep.subr.bf16.mxu1 %v326_v1 }
  0x1c   :  { %279 = vmatpush3.bf16.msra.mxu1 %v300_v10 }
  0x1d   :  { %280 = vmatprep.subr.bf16.mxu1 %v326_v1 }
  0x20   :  { %281 = vmatpush3.bf16.msra.mxu1 %v301_v11 }
  0xdc   :  { %v97_v13 = vpop.f32.mrb[0].mxu0 }
  0xdd   :  { %v98_v14 = vadd.f32 %v233_v12, %v97_v13  ;;  %v264_v15 = vpop.f32.mrb[1].mxu0 }
  0xde   :  { %v100_v16 = vpop.f32.mrb[2].mxu0 }
  0xdf   :  { %v101_v17 = vadd.f32 %v233_v12, %v100_v16  ;;  %v265_v18 = vpop.f32.mrb[3].mxu0  ;;  %v104_v19 = vmax.f32 %v98_v14, 0.0 }
  0xe1   :  { %v105_v20 = vmax.f32 %v101_v17, 0.0 }
  0xe3   :  { %v106_v21 = vpack.c.bf16 %v105_v20, %v104_v19 }
  0xe5   :  { %283 = vmatmul.mubr.bf16.vlgmr.msra.gmra.mrb[0].mxu1 %v106_v21 }
 0x1b8   :  { %v205_v23 = vpop.f32.mrb[0].mxu1 }
 0x1b9   :  { %v212_v24 = vadd.f32 %v232_v22, %v205_v23  ;;  %v284_v25 = vpop.f32.mrb[1].mxu1 }
 0x1ba   :  { %v208_v26 = vpop.f32.mrb[2].mxu1 }
 0x1bb   :  { %214 = vst.msk [vmem:[#allocation2] sm:$0xff] %vm59_vm1, %v212_v24  ;;  %v213_v27 = vadd.f32 %v232_v22, %v208_v26  ;;  %v285_v28 = vpop.f32.mrb[3].mxu1 }
 0x1bd   :  { %215 = vst.msk [vmem:[#allocation2 + $0x8] sm:$0xff] %vm59_vm1, %v213_v27 }
 0x1be   :  { %313 = shalt.err (!%p310_p4)
}
 0x1bf   :  { %s314_s19 = scalar_lea.hbm %s420_s5, 256 }
 0x1c0   :  { %p315_p5 = scmp.ne.s32.totalorder %s420_s5, %s314_s19  ;;  %p318_p6 = scmp.lt.u32.totalorder %s314_s19, %s420_s5 }
 0x1c2   :  { %p320_p7 = pnand %p318_p6, %p315_p5 }
 0x1c4   :  { %323 = shalt.err (!%p320_p7)
}
 0x1c5   :  { %s329_s24 = smov 128   ;;  %s330_s25 = smov 8  }
 0x1c6   :  { %227 = dma.vmem_to_hbm [thread:$0]  %s222_s17, 256, %s420_s5, [#allocation3], %s329_s24, %s329_s24, %s330_s25  }
 0x1c7   :  { %324 = dma.done.wait [#allocation3], 256  }
 0x1c8   :  { %325 = vsyncadd [#allocation3], 4294967040 }
 0x1c9   :  { %231 = vsyncpa [#allocation3], 1 }

</bundles_post_ra>
